<compile_context>
chip_gen: v5e
topology: v5e:2x2
jax: 0.10.0
libtpu: 0.0.40
codegen_flags: <defaults>
</compile_context>

<pallas_src>
from functools import partial

import jax
import jax.numpy as jnp
from jax.experimental import pallas as pl
from jax.experimental.pallas import tpu as pltpu


def _pool_linear_tanh_kernel(x_ref, w_ref, b_ref, o_ref, acc_ref, *,
                             k_total, tile_k, mask_k):
    # x_ref:   (tile_n, tile_k) f32 VMEM
    # w_ref:   (1, tile_k)      f32 VMEM (pool folded in, lane-dense)
    # b_ref:   (1,)             f32 SMEM
    # o_ref:   (1, tile_n)      f32 VMEM (lane-dense output block)
    # acc_ref: (tile_n, 1)      f32 VMEM scratch (reduction accumulator)
    kk = pl.program_id(1)

    @pl.when(kk == 0)
    def _init():
        acc_ref[...] = jnp.zeros_like(acc_ref)

    xw = x_ref[...] * w_ref[...]                      # VPU, exact f32
    if mask_k:
        # Ragged last K block: zero out the out-of-bounds columns.
        col = kk * tile_k + jax.lax.broadcasted_iota(jnp.int32, xw.shape, 1)
        xw = jnp.where(col < k_total, xw, 0.0)
    acc_ref[...] += jnp.sum(xw, axis=-1, keepdims=True)   # XLU reduce

    @pl.when(kk == pl.num_programs(1) - 1)
    def _finalize():
        # Transpose first -> bias/tanh run on the lane-dense (1, tile_n) layout.
        o_ref[...] = jnp.tanh(acc_ref[...].T + b_ref[0])


def _pick_tiles(n, k, *, tile_bytes=4 << 20):
    """Pick (tile_n, tile_k) targeting ~4 MiB f32 x-tiles.

    Batch tile: the full batch when tiny, otherwise a multiple of 8 capped at
    512, split >=2 ways when the batch allows so v7x megacore can shard the
    "parallel" N axis.  Reduction tile: full K when a (tile_n, K) slab fits
    the budget, otherwise the largest 128-lane multiple that does.
    """
    if n <= 8:
        tile_n = n
    else:
        n8 = ((n + 7) // 8) * 8
        tile_n = min(512, n8)
        if tile_n >= n8 and n8 >= 16:          # would be a single tile: split
            tile_n = ((n8 // 2 + 7) // 8) * 8

    if tile_n * k * 4 <= tile_bytes:
        tile_k = k                              # no K tiling needed
    else:
        tile_k = max(128, (tile_bytes // (tile_n * 4)) // 128 * 128)
        tile_k = min(tile_k, k)
    return tile_n, tile_k


def fastrcnn_predictor_padreg(x, w, b, *, tile_bytes=4 << 20):
    """x: (N, C, H, W) f32; w: (C, 1) f32; b: (1,) f32.  Returns (N,) f32."""
    N, C, H, W = x.shape
    K = C * H * W

    tile_n, tile_k = _pick_tiles(N, K, tile_bytes=tile_bytes)
    num_n = pl.cdiv(N, tile_n)
    num_k = pl.cdiv(K, tile_k)
    mask_k = (K % tile_k) != 0

    # Flatten NCHW -> (N, K): free for contiguous input.  No activation pad:
    # the ragged last batch block's garbage rows are sliced away below.
    x2 = x.reshape(N, K)

    # Fold AdaptiveAvgPool2d(1) into the linear weight, lane-dense (1, K).
    w_full = (jnp.repeat(w.reshape(C), H * W) / jnp.float32(H * W)
              ).astype(jnp.float32).reshape(1, K)
    b1 = b.reshape(1).astype(jnp.float32)

    cost = pl.CostEstimate(
        flops=2 * N * K,
        transcendentals=N,
        bytes_accessed=N * K * 4 + K * 4 + N * 4,
    )

    kernel = partial(_pool_linear_tanh_kernel,
                     k_total=K, tile_k=tile_k, mask_k=mask_k)

    out = pl.pallas_call(
        kernel,
        out_shape=jax.ShapeDtypeStruct((num_n, tile_n), jnp.float32),
        grid_spec=pltpu.PrefetchScalarGridSpec(
            num_scalar_prefetch=0,
            grid=(num_n, num_k),
            in_specs=[
                # x: one (tile_n, tile_k) slab per grid step (double-buffered).
                pl.BlockSpec((tile_n, tile_k), lambda i, kk: (i, kk)),
                # folded weight: lane-dense (1, tile_k) slice.
                pl.BlockSpec((1, tile_k), lambda i, kk: (0, kk)),
                # bias: single scalar in SMEM.
                pl.BlockSpec(memory_space=pltpu.MemorySpace.SMEM),
            ],
            out_specs=pl.BlockSpec((1, tile_n), lambda i, kk: (i, 0)),
            scratch_shapes=[pltpu.VMEM((tile_n, 1), jnp.float32)],
        ),
        compiler_params=pltpu.CompilerParams(
            dimension_semantics=("parallel", "arbitrary"),
            vmem_limit_bytes=48 * 1024 * 1024,
        ),
        cost_estimate=cost,
    )(x2, w_full, b1)

    # (num_n, tile_n) -> (N,): drop any ragged-tail garbage rows.
    return out.reshape(-1)[:N]


def _reference(x, w, b):
    pooled = jnp.mean(x, axis=(2, 3))                       # (N, C)
    logits = jnp.sum(pooled * w[:, 0], axis=-1) + b[0]      # exact f32
    return jnp.tanh(logits)                                 # (N,)


if __name__ == "__main__":
    key = jax.random.PRNGKey(0)
    kx, kw, kb = jax.random.split(key, 3)

    N, C, H, W = 2, 4, 16, 16
    x = jax.random.normal(kx, (N, C, H, W), dtype=jnp.float32)

    # Deterministic parameter init (shapes from nn.Linear(in_channels, 1)).
    bound = 1.0 / (C ** 0.5)
    w = jax.random.uniform(kw, (C, 1), minval=-bound, maxval=bound,
                           dtype=jnp.float32)
    b = jax.random.uniform(kb, (1,), minval=-bound, maxval=bound,
                           dtype=jnp.float32)

    out = fastrcnn_predictor_padreg(x, w, b)
    out = jax.block_until_ready(out)

    ref = _reference(x, w, b)
    assert out.shape == (N,), out.shape
    assert jnp.allclose(out, ref, atol=1e-5, rtol=1e-5), (out, ref)
    print("KERNEL_OK")
</pallas_src>

<mosaic_0001>
module attributes {stable_mosaic.version = 11 : i64} {
  func.func @_pool_linear_tanh_kernel(%arg0: i32, %arg1: i32, %arg2: memref<2x1024xf32, #tpu.memory_space<vmem>>, %arg3: memref<1x1024xf32, #tpu.memory_space<vmem>>, %arg4: memref<1xf32, #tpu.memory_space<smem>>, %arg5: memref<1x2xf32, #tpu.memory_space<vmem>>, %arg6: memref<2x1xf32, #tpu.memory_space<vmem>>) attributes {dimension_semantics = [#tpu.dimension_semantics<parallel>, #tpu.dimension_semantics<arbitrary>], iteration_bounds = array<i64: 1, 1>, scalar_prefetch = 0 : i64, scratch_operands = 1 : i64, tpu.core_type = #tpu.core_type<tc>, window_params = [{transform_indices = @transform_0, window_bounds = array<i64: 2, 1024>}, {transform_indices = @transform_1, window_bounds = array<i64: 1, 1024>}, {transform_indices = @transform_2, window_bounds = array<i64: 1>}, {transform_indices = @transform_3, window_bounds = array<i64: 1, 2>}]} {
    %c0_i32 = arith.constant 0 : i32
    %0 = arith.cmpi eq, %arg1, %c0_i32 : i32
    %1 = arith.extui %0 : i1 to i32
    %c0_i32_0 = arith.constant 0 : i32
    %2 = arith.cmpi ne, %1, %c0_i32_0 : i32
    scf.if %2 {
      %cst_10 = arith.constant 0.000000e+00 : f32
      %15 = vector.broadcast %cst_10 : f32 to vector<2x1xf32>
      %c0_11 = arith.constant 0 : index
      %c0_12 = arith.constant 0 : index
      %16 = vector.load %arg6[%c0_11, %c0_12] : memref<2x1xf32, #tpu.memory_space<vmem>>, vector<2x1xf32>
      tpu.vector_store %arg6[%c0_11, %c0_12], %15 {strides = array<i32>} : memref<2x1xf32, #tpu.memory_space<vmem>>, vector<2x1xf32>,
    } else {
    }
    %c0 = arith.constant 0 : index
    %c0_1 = arith.constant 0 : index
    %3 = vector.load %arg2[%c0, %c0_1] : memref<2x1024xf32, #tpu.memory_space<vmem>>, vector<2x1024xf32>
    %c0_2 = arith.constant 0 : index
    %c0_3 = arith.constant 0 : index
    %4 = vector.load %arg3[%c0_2, %c0_3] : memref<1x1024xf32, #tpu.memory_space<vmem>>, vector<1x1024xf32>
    %5 = vector.broadcast %4 : vector<1x1024xf32> to vector<2x1024xf32>
    %6 = arith.mulf %3, %5 : vector<2x1024xf32>
    %c0_4 = arith.constant 0 : index
    %c0_5 = arith.constant 0 : index
    %7 = vector.load %arg6[%c0_4, %c0_5] : memref<2x1xf32, #tpu.memory_space<vmem>>, vector<2x1xf32>
    %cst = arith.constant dense<0.000000e+00> : vector<2xf32>
    %8 = vector.multi_reduction <add>, %6, %cst [1] : vector<2x1024xf32> to vector<2xf32>
    %9 = vector.shape_cast %8 : vector<2xf32> to vector<2x1xf32>
    %10 = arith.addf %7, %9 : vector<2x1xf32>
    %c0_6 = arith.constant 0 : index
    %c0_7 = arith.constant 0 : index
    %11 = vector.load %arg6[%c0_6, %c0_7] : memref<2x1xf32, #tpu.memory_space<vmem>>, vector<2x1xf32>
    tpu.vector_store %arg6[%c0_6, %c0_7], %10 {strides = array<i32>} : memref<2x1xf32, #tpu.memory_space<vmem>>, vector<2x1xf32>,
    %c0_i32_8 = arith.constant 0 : i32
    %12 = arith.cmpi eq, %arg1, %c0_i32_8 : i32
    %13 = arith.extui %12 : i1 to i32
    %c0_i32_9 = arith.constant 0 : i32
    %14 = arith.cmpi ne, %13, %c0_i32_9 : i32
    scf.if %14 {
      %c0_10 = arith.constant 0 : index
      %c0_11 = arith.constant 0 : index
      %15 = vector.load %arg6[%c0_10, %c0_11] : memref<2x1xf32, #tpu.memory_space<vmem>>, vector<2x1xf32>
      %16 = tpu.transpose %15, [1, 0] : vector<2x1xf32> -> vector<1x2xf32>
      %c0_12 = arith.constant 0 : index
      %17 = memref.load %arg4[%c0_12] : memref<1xf32, #tpu.memory_space<smem>>
      %18 = vector.broadcast %17 : f32 to vector<1x2xf32>
      %19 = arith.addf %16, %18 : vector<1x2xf32>
      %20 = math.tanh %19 : vector<1x2xf32>
      %c0_13 = arith.constant 0 : index
      %c0_14 = arith.constant 0 : index
      %21 = vector.load %arg5[%c0_13, %c0_14] : memref<1x2xf32, #tpu.memory_space<vmem>>, vector<1x2xf32>
      tpu.vector_store %arg5[%c0_13, %c0_14], %20 {strides = array<i32>} : memref<1x2xf32, #tpu.memory_space<vmem>>, vector<1x2xf32>,
    } else {
    }
    return
  }
  func.func @transform_0(%arg0: i32, %arg1: i32) -> (i32, i32) {
    %c0_i32 = arith.constant 0 : i32
    return %arg0, %arg1 : i32, i32
  }
  func.func @transform_1(%arg0: i32, %arg1: i32) -> (i32, i32) {
    %c0_i32 = arith.constant 0 : i32
    %c0_i32_0 = arith.constant 0 : i32
    return %c0_i32, %arg1 : i32, i32
  }
  func.func @transform_2(%arg0: i32, %arg1: i32) -> i32 {
    %c0_i32 = arith.constant 0 : i32
    %c0_i32_0 = arith.constant 0 : i32
    return %c0_i32 : i32
  }
  func.func @transform_3(%arg0: i32, %arg1: i32) -> (i32, i32) {
    %c0_i32 = arith.constant 0 : i32
    %c0_i32_0 = arith.constant 0 : i32
    return %arg0, %c0_i32 : i32, i32
  }
}

</mosaic_0001>

<bundles_post_ra>
// kernel: tpu_custom_call.1
= control target key start
LH: loop header
LB: loop body
LE: loop exit
PB: predicated region body
PF: predicated region fallthrough
CT: control target
= control target key end

     0   :  { %9 = vsyncpa [#allocation5], 0  ;;  %s319_s0 = inlined_call_operand.hbm [shape: f32[2,1024], index: 0, kind: input, shape index: {}]   ;;  %s320_s1 = inlined_call_operand.hbm [shape: f32[1,1024], index: 1, kind: input, shape index: {}]   ;;  %s321_s2 = inlined_call_operand.<no memory space> [shape: f32[1], index: 2, kind: input, shape index: {}]   ;;  %s322_s3 = inlined_call_operand.hbm [shape: f32[1,2], index: 3, kind: output, shape index: {}]  }
   0x1   :  { %10 = vsyncpa [#allocation8], 0 }
   0x2   :  { %11 = vsyncpa [#allocation6], 0  ;;  %s17_s14 = sshll.u32 %s319_s0, 4  ;;  %s267_s15 = smov [#allocation4]   ;;  %s18_s14 = int_to_ptr.hbm [resolvable:$true] %s17_s14 }
   0x3   :  { %s19_s16 = sshll.u32 %s267_s15, 4  ;;  %s28_s19 = sshll.u32 %s320_s1, 4  ;;  %s20_s16 = int_to_ptr.vmem [resolvable:$true] %s19_s16  ;;  %s29_s19 = int_to_ptr.hbm [resolvable:$true] %s28_s19 }
   0x4   :  { %22 = dma.hbm_to_vmem [thread:$0]  %s18_s14, 256, %s20_s16, [#allocation5]  }
   0x5   :  { %s268_s20 = smov [#allocation7]  }
   0x6   :  { %s30_s21 = sshll.u32 %s268_s20, 4  ;;  %s31_s21 = int_to_ptr.vmem [resolvable:$true] %s30_s21 }
   0x7   :  { %33 = dma.hbm_to_vmem [thread:$0]  %s29_s19, 128, %s31_s21, [#allocation8]  }
   0x8   :  { %261 = dma.done.wait [#allocation5], 256  }
   0x9   :  { %262 = vsyncadd [#allocation5], 4294967040 }
   0xa   :  { %263 = dma.done.wait [#allocation8], 128  }
   0xb   :  { %264 = vsyncadd [#allocation8], 4294967168  ;;  %v52_v0 = vld [vmem:[#allocation7] sm:$0xff]  ;;  %vm68_vm0 = vcmask 1041408   ;;  %vm70_vm1 = vcmask 1045508   ;;  %vm72_vm2 = vcmask 1043456   ;;  %v160_v53 = vstv %s321_s2 }
   0xc   :  { %v54_v1 = vperm.slane %v52_v0, 0  ;;  %v55_v2 = vperm.slane %v52_v0, 1  ;;  %v56_v3 = vperm.slane %v52_v0, 2  ;;  %v57_v4 = vperm.slane %v52_v0, 3  ;;  %v50_v12 = vld [vmem:[#allocation4] sm:$0xff]  ;;  %v51_v16 = vld [vmem:[#allocation4 + $0x8] sm:$0xff] }
   0xd   :  { %v58_v5 = vperm.slane %v52_v0, 4  ;;  %v59_v6 = vperm.slane %v52_v0, 5  ;;  %v60_v7 = vperm.slane %v52_v0, 6  ;;  %v61_v8 = vperm.slane %v52_v0, 7  ;;  %s270_s22 = smov [#allocation9]   ;;  %s172_s26 = sshll.u32 %s322_s3, 4  ;;  %s173_s26 = int_to_ptr.hbm [resolvable:$true] %s172_s26 }
   0xe   :  { %v62_v9 = vrot.slane %v55_v2, 6  ;;  %v63_v10 = vrot.slane %v56_v3, 4  ;;  %v64_v11 = vrot.slane %v57_v4, 2  ;;  %vm48_vm3 = vcmask 1024   ;;  %s170_s23 = sshll.u32 %s270_s22, 4  ;;  %s171_s23 = int_to_ptr.vmem [resolvable:$true] %s170_s23 }
   0xf   :  { %v65_v13 = vrot.slane %v59_v6, 6  ;;  %v66_v14 = vrot.slane %v60_v7, 4  ;;  %v67_v15 = vrot.slane %v61_v8, 2  ;;  %v269_v19 = vmov 0.0  }
  0x10   :  { %v69_v17 = vsel %vm68_vm0, %v54_v1, %v62_v9  ;;  %v71_v18 = vsel %vm70_vm1, %v63_v10, %v64_v11  ;;  %49 = vst.msk [vmem:[#allocation2] sm:$0x3] %vm48_vm3, %v269_v19  ;;  %vm163_vm4 = vcmask 8192  }
  0x11   :  { %v73_v20 = vsel %vm72_vm2, %v69_v17, %v71_v18  ;;  %v74_v21 = vsel %vm68_vm0, %v58_v5, %v65_v13  ;;  %v75_v22 = vsel %vm70_vm1, %v66_v14, %v67_v15 }
  0x12   :  { %v76_v23 = vsel %vm72_vm2, %v74_v21, %v75_v22  ;;  %v79_v24 = vmul.f32 %v73_v20, %v50_v12 }
  0x13   :  { %v80_v25 = vmul.f32 %v76_v23, %v51_v16 }
  0x14   :  { %84 = vst [vmem:[#allocation1] ss:$4 sm:$0xff] %v79_v24 }
  0x15   :  { %86 = vst [vmem:[#allocation1 + $0x20] ss:$4 sm:$0xff] %v80_v25 }
  0x17   :  { %v81_v49 = vld [vmem:[#allocation2] sm:$0x3] }
  0x1b   :  { %v87_v26 = vld.sshfl [vmem:[#allocation1] sm:$0xff pattern:$0x73625140]  ;;  %v88_v27 = vld.sshfl [vmem:[#allocation1 + $0x8] sm:$0xff pattern:$0x73625140] }
  0x1c   :  { %v89_v28 = vld.sshfl [vmem:[#allocation1 + $0x10] sm:$0xff pattern:$0x73625140]  ;;  %v90_v29 = vld.sshfl [vmem:[#allocation1 + $0x18] sm:$0xff pattern:$0x73625140] }
  0x1d   :  { %v103_v30 = vsel %vm68_vm0, %v87_v26, 0.0  ;;  %v104_v31 = vsel %vm68_vm0, %v88_v27, 0.0  ;;  %v106_v32 = vsel %vm68_vm0, %v89_v28, 0.0  ;;  %v91_v33 = vld.sshfl [vmem:[#allocation1 + $0x20] sm:$0xff pattern:$0x73625140] }
  0x1e   :  { %v105_v34 = vadd.f32 %v104_v31, %v103_v30  ;;  %v108_v35 = vsel %vm68_vm0, %v90_v29, 0.0  ;;  %v92_v36 = vld.sshfl [vmem:[#allocation1 + $0x28] sm:$0xff pattern:$0x73625140]  ;;  %v110_v38 = vsel %vm68_vm0, %v91_v33, 0.0 }
  0x1f   :  { %v93_v39 = vld.sshfl [vmem:[#allocation1 + $0x30] sm:$0xff pattern:$0x73625140]  ;;  %v112_v41 = vsel %vm68_vm0, %v92_v36, 0.0 }
  0x20   :  { %v107_v37 = vadd.f32 %v106_v32, %v105_v34  ;;  %v94_v42 = vld.sshfl [vmem:[#allocation1 + $0x38] sm:$0xff pattern:$0x73625140]  ;;  %v114_v44 = vsel %vm68_vm0, %v93_v39, 0.0 }
  0x21   :  { %v116_v46 = vsel %vm68_vm0, %v94_v42, 0.0 }
  0x22   :  { %v109_v40 = vadd.f32 %v108_v35, %v107_v37 }
  0x24   :  { %v111_v43 = vadd.f32 %v110_v38, %v109_v40 }
  0x26   :  { %v113_v45 = vadd.f32 %v112_v41, %v111_v43 }
  0x28   :  { %v115_v47 = vadd.f32 %v114_v44, %v113_v45 }
  0x2a   :  { %v117_v48 = vadd.f32 %v116_v46, %v115_v47 }
  0x2c   :  { %118 = vadd.xlane.f32.xlu0 %v117_v48 }
  0x9f   :  { %v119_v50 = vpop.xlane.xlu0 %118 }
  0xa0   :  { %v120_v51 = vadd.f32 %v119_v50, %v81_v49 }
  0xa2   :  { %122 = vst.msk [vmem:[#allocation2] sm:$0x3] %vm48_vm3, %v120_v51 }
  0xa9   :  { %v126_v52 = vld [vmem:[#allocation2] sm:$0x3] }
  0xaa   :  { %127 = vxpose.xlu0.b32.start.end [1/1] (short) (narrow) %v126_v52, 8 }
 0x14e   :  { %v143_v54 = vpop.trf.xlu0 }
 0x14f   :  { %v161_v55 = vadd.f32 %v160_v53, %v143_v54 }
 0x151   :  { %187 = vtanh.f32 %v161_v55 }
 0x157   :  { %v188_v56 = vpop.eup %187 }
 0x158   :  { %164 = vst.msk [vmem:[#allocation9] sm:$0x1] %vm163_vm4, %v188_v56 }
 0x159   :  { %175 = dma.vmem_to_hbm [thread:$0]  %s171_s23, 16, %s173_s26, [#allocation6]  }
 0x15a   :  { %265 = dma.done.wait [#allocation6], 16  }
 0x15b   :  { %266 = vsyncadd [#allocation6], 4294967280 }
 0x15c   :  { %180 = vsyncpa [#allocation5], 1 }
 0x15d   :  { %181 = vsyncpa [#allocation8], 1 }
 0x15e   :  { %182 = vsyncpa [#allocation6], 1 }

</bundles_post_ra>
